<compile_context>
chip_gen: v6e
topology: v6e:2x2x1
jax: 0.10.0
libtpu: 0.0.40
codegen_flags: <defaults>
</compile_context>

<pallas_src>
import jax
import jax.numpy as jnp
from jax import lax
from jax.experimental import pallas as pl
from jax.experimental.pallas import tpu as pltpu

# Small synthetic config (module default hidden_size=768 shrunk for the demo).
B, S, H, NH, FF, C, VOCAB = 2, 8, 32, 2, 64, 2, 64
HD = H // NH
OUT_ROWS, OUT_LANES = 8, 128          # lane-dense padded logits tile

# Row layout of the packed small-parameter array (f32, (16, 128), zero padded).
R_LN0G, R_LN0B = 0, 1
R_BQKV = 2
R_BO = 3
R_LN1G, R_LN1B = 4, 5
R_B1 = 6
R_B2 = 7
R_LN2G, R_LN2B = 8, 9
R_BP = 10
R_BC = 11                             # bias of classifier, padded to 128 lanes
N_PROWS = 16


def _layer_norm(x, g, b, eps=1e-12):
    mu = jnp.mean(x, axis=-1, keepdims=True)
    var = jnp.mean((x - mu) ** 2, axis=-1, keepdims=True)
    return (x - mu) * lax.rsqrt(var + eps) * g + b


def _gelu(x):
    # tanh approximation (EUP).  PyTorch BERT's default GELU is erf-based;
    # logits differ at ~1e-3 level (acceptable for inference).
    return 0.5 * x * (1.0 + jnp.tanh(0.7978845608028654 *
                                     (x + 0.044715 * x * x * x)))


def bert_classifier_kernel(
    valid_ref,                        # (B,) int32   — scalar prefetch (SMEM)
    emb_ref,                          # (B*S, H) f32 — summed embeddings
    wqkv_ref, wo_ref, w1_ref, w2_ref, wp_ref, wc_ref,   # bf16 weights
    pvec_ref,                         # (16, 128) f32 packed biases / LN params
    out_ref,                          # (8, 128) f32 padded logits
):
    f32, bf16 = jnp.float32, jnp.bfloat16

    # ---- gen_attention_mask: additive key bias, (B, 1, S) ----
    pos = lax.broadcasted_iota(jnp.int32, (B, 1, S), 2)
    row_b = lax.broadcasted_iota(jnp.int32, (B, 1, S), 0)
    vlen = jnp.zeros((B, 1, S), jnp.int32)
    for b in range(B):                         # B static, scalar SMEM reads
        vlen = jnp.where(row_b == b, valid_ref[b], vlen)
    mask_bias = jnp.where(pos < vlen, 0.0, -1e9).astype(f32)

    # ---- embedding LayerNorm (f32) ----
    x = _layer_norm(emb_ref[...],
                    pvec_ref[R_LN0G:R_LN0G + 1, :H],
                    pvec_ref[R_LN0B:R_LN0B + 1, :H])           # (B*S, H) f32

    # ---- fused QKV projection: single (B*S,H)@(H,3H) bf16 MXU matmul ----
    qkv = jnp.dot(x.astype(bf16), wqkv_ref[...],
                  preferred_element_type=f32)
    qkv = qkv + pvec_ref[R_BQKV:R_BQKV + 1, :3 * H]            # (B*S, 3H)
    qkv3 = qkv.reshape(B, S, 3 * H)                            # sublane split

    # ---- self-attention: NH=2 static iters, each batched over B ----
    scale = 1.0 / float(HD) ** 0.5
    ctx_heads = []
    for h in range(NH):
        qh = qkv3[:, :, h * HD:(h + 1) * HD].astype(bf16)          # (B,S,HD)
        kh = qkv3[:, :, H + h * HD:H + (h + 1) * HD].astype(bf16)
        vh = qkv3[:, :, 2 * H + h * HD:2 * H + (h + 1) * HD].astype(bf16)
        s = jnp.einsum('bqd,bkd->bqk', qh, kh,
                       preferred_element_type=f32) * scale
        s = s + mask_bias                          # broadcast over query rows
        s = s - jnp.max(s, axis=-1, keepdims=True)
        p = jnp.exp(s)
        p = p * pl.reciprocal(jnp.sum(p, axis=-1, keepdims=True), approx=True)
        ctx_heads.append(jnp.einsum('bqk,bkd->bqd', p.astype(bf16), vh,
                                    preferred_element_type=f32))   # (B,S,HD)
    ctx_all = jnp.concatenate(ctx_heads, axis=-1).reshape(B * S, H)

    attn = jnp.dot(ctx_all.astype(bf16), wo_ref[...],
                   preferred_element_type=f32) + pvec_ref[R_BO:R_BO + 1, :H]
    x = _layer_norm(x + attn,
                    pvec_ref[R_LN1G:R_LN1G + 1, :H],
                    pvec_ref[R_LN1B:R_LN1B + 1, :H])

    # ---- feed forward ----
    hdn = _gelu(jnp.dot(x.astype(bf16), w1_ref[...],
                        preferred_element_type=f32)
                + pvec_ref[R_B1:R_B1 + 1, :FF])
    ff = jnp.dot(hdn.astype(bf16), w2_ref[...],
                 preferred_element_type=f32) + pvec_ref[R_B2:R_B2 + 1, :H]
    x = _layer_norm(x + ff,
                    pvec_ref[R_LN2G:R_LN2G + 1, :H],
                    pvec_ref[R_LN2B:R_LN2B + 1, :H])

    # ---- pooler (tanh dense on [CLS]) + classifier, fully vectorized ----
    # CLS-row gather as a tiny selection matmul: sel[r, r*S] = 1 for r < B.
    # This also pads rows up to 8 so every downstream op / the final store is
    # unmasked and lane/sublane dense.
    rr = lax.broadcasted_iota(jnp.int32, (OUT_ROWS, B * S), 0)
    cc = lax.broadcasted_iota(jnp.int32, (OUT_ROWS, B * S), 1)
    sel = ((cc == rr * S) & (rr < B)).astype(bf16)                 # (8, B*S)
    cls8 = jnp.dot(sel, x.astype(bf16), preferred_element_type=f32)  # (8, H)

    # dr_rate=None in the module default -> dropout is identity here.
    # TODO(synk): dr_rate != None would use pltpu.prng_seed/prng_random_bits.
    pooled = jnp.tanh(jnp.dot(cls8.astype(bf16), wp_ref[...],
                              preferred_element_type=f32)
                      + pvec_ref[R_BP:R_BP + 1, :H])               # (8, H)
    # wc is pre-padded to (H, 128) and bc row is 128-wide (zeros beyond C), so
    # logits columns C..127 are exactly zero and the store is lane-dense.
    logits = jnp.dot(pooled.astype(bf16), wc_ref[...],
                     preferred_element_type=f32) + pvec_ref[R_BC:R_BC + 1, :]
    out_ref[...] = logits                        # single unmasked (8,128) store


def init_params(key):
    def nrm(k, shape):
        return (0.02 * jax.random.normal(k, shape)).astype(jnp.float32)
    ks = jax.random.split(key, 16)
    return {
        'word_emb': nrm(ks[0], (VOCAB, H)),
        'type_emb': nrm(ks[1], (2, H)),
        'pos_emb':  nrm(ks[2], (S, H)),
        'ln0_g': jnp.ones((1, H), jnp.float32), 'ln0_b': jnp.zeros((1, H), jnp.float32),
        'wq': nrm(ks[3], (H, H)), 'bq': jnp.zeros((1, H), jnp.float32),
        'wk': nrm(ks[4], (H, H)), 'bk': jnp.zeros((1, H), jnp.float32),
        'wv': nrm(ks[5], (H, H)), 'bv': jnp.zeros((1, H), jnp.float32),
        'wo': nrm(ks[6], (H, H)), 'bo': jnp.zeros((1, H), jnp.float32),
        'ln1_g': jnp.ones((1, H), jnp.float32), 'ln1_b': jnp.zeros((1, H), jnp.float32),
        'w1': nrm(ks[7], (H, FF)), 'b1': jnp.zeros((1, FF), jnp.float32),
        'w2': nrm(ks[8], (FF, H)), 'b2': jnp.zeros((1, H), jnp.float32),
        'ln2_g': jnp.ones((1, H), jnp.float32), 'ln2_b': jnp.zeros((1, H), jnp.float32),
        'wp': nrm(ks[9], (H, H)), 'bp': jnp.zeros((1, H), jnp.float32),
        'wc': nrm(ks[10], (H, C)), 'bc': jnp.zeros((1, C), jnp.float32),
    }


def pack_params(p):
    """Host-side packing: fused bf16 QKV, bf16 weights, lane-padded classifier
    weight, and one (16,128) f32 array holding every small vector parameter."""
    bf16 = jnp.bfloat16
    wqkv = jnp.concatenate([p['wq'], p['wk'], p['wv']], axis=1).astype(bf16)
    wc = jnp.zeros((H, OUT_LANES), jnp.float32).at[:, :C].set(p['wc']).astype(bf16)

    pvec = jnp.zeros((N_PROWS, OUT_LANES), jnp.float32)
    rows = [
        (R_LN0G, p['ln0_g']), (R_LN0B, p['ln0_b']),
        (R_BQKV, jnp.concatenate([p['bq'], p['bk'], p['bv']], axis=1)),
        (R_BO, p['bo']),
        (R_LN1G, p['ln1_g']), (R_LN1B, p['ln1_b']),
        (R_B1, p['b1']), (R_B2, p['b2']),
        (R_LN2G, p['ln2_g']), (R_LN2B, p['ln2_b']),
        (R_BP, p['bp']), (R_BC, p['bc']),
    ]
    for r, vec in rows:
        flat = vec.reshape(-1)
        pvec = pvec.at[r, :flat.shape[0]].set(flat)

    return {
        'wqkv': wqkv,
        'wo': p['wo'].astype(bf16),
        'w1': p['w1'].astype(bf16),
        'w2': p['w2'].astype(bf16),
        'wp': p['wp'].astype(bf16),
        'wc': wc,
        'pvec': pvec,
    }


def bert_classifier_forward(token_ids, valid_length, segment_ids, params):
    # Glue: embedding lookups are gathers -> plain JAX; everything else runs
    # inside the Pallas kernel.
    word_e = params['word_emb'][token_ids]                    # (B, S, H)
    type_e = params['type_emb'][segment_ids]                  # (B, S, H)
    pos_e = params['pos_emb'][None, :, :]                     # (1, S, H)
    emb = (word_e + type_e + pos_e).reshape(B * S, H).astype(jnp.float32)

    packed = pack_params(params)
    valid = valid_length.astype(jnp.int32).reshape(B)

    tensor_ins = [emb, packed['wqkv'], packed['wo'], packed['w1'],
                  packed['w2'], packed['wp'], packed['wc'], packed['pvec']]

    def full_spec(a):
        nd = a.ndim
        return pl.BlockSpec(a.shape, lambda i, v, _n=nd: (0,) * _n)

    # TODO(synk): at real BERT dims (H=768, FF=3072, S>=128) replace the
    # grid=(1,) whole-weights-in-VMEM structure with a ("parallel","arbitrary")
    # grid over query rows / reduction dims and set vmem_limit_bytes (v7x has
    # only 64 MiB VMEM and 2 TensorCores that need a parallel axis).
    padded = pl.pallas_call(
        bert_classifier_kernel,
        out_shape=jax.ShapeDtypeStruct((OUT_ROWS, OUT_LANES), jnp.float32),
        grid_spec=pltpu.PrefetchScalarGridSpec(
            num_scalar_prefetch=1,
            grid=(1,),
            in_specs=[full_spec(a) for a in tensor_ins],
            out_specs=pl.BlockSpec((OUT_ROWS, OUT_LANES), lambda i, v: (0, 0)),
        ),
        compiler_params=pltpu.CompilerParams(
            dimension_semantics=("arbitrary",)),
    )(valid, *tensor_ins)

    return padded[:B, :C]


if __name__ == "__main__":
    key = jax.random.PRNGKey(0)
    k_tok, k_params = jax.random.split(key)

    token_ids = jax.random.randint(k_tok, (B, S), 0, VOCAB, dtype=jnp.int32)
    segment_ids = jnp.zeros((B, S), dtype=jnp.int32)
    valid_length = jnp.array([5, S], dtype=jnp.int32)

    params = init_params(k_params)

    logits = bert_classifier_forward(token_ids, valid_length, segment_ids, params)
    logits = jax.block_until_ready(logits)

    assert logits.shape == (B, C) and bool(jnp.all(jnp.isfinite(logits)))
    print("KERNEL_OK")
</pallas_src>

<mosaic_0001>
module attributes {stable_mosaic.version = 11 : i64} {
  func.func @bert_classifier_kernel(%arg0: i32, %arg1: memref<2xi32, #tpu.memory_space<smem>>, %arg2: memref<16x32xf32, #tpu.memory_space<vmem>>, %arg3: memref<32x96xbf16, #tpu.memory_space<vmem>>, %arg4: memref<32x32xbf16, #tpu.memory_space<vmem>>, %arg5: memref<32x64xbf16, #tpu.memory_space<vmem>>, %arg6: memref<64x32xbf16, #tpu.memory_space<vmem>>, %arg7: memref<32x32xbf16, #tpu.memory_space<vmem>>, %arg8: memref<32x128xbf16, #tpu.memory_space<vmem>>, %arg9: memref<16x128xf32, #tpu.memory_space<vmem>>, %arg10: memref<8x128xf32, #tpu.memory_space<vmem>>) attributes {dimension_semantics = [#tpu.dimension_semantics<arbitrary>], iteration_bounds = array<i64: 1>, scalar_prefetch = 1 : i64, scratch_operands = 0 : i64, tpu.core_type = #tpu.core_type<tc>, window_params = [{pipeline_mode = #tpu.pipeline_mode<synchronous>, transform_indices = @transform_0, window_bounds = array<i64: 16, 32>}, {pipeline_mode = #tpu.pipeline_mode<synchronous>, transform_indices = @transform_1, window_bounds = array<i64: 32, 96>}, {pipeline_mode = #tpu.pipeline_mode<synchronous>, transform_indices = @transform_2, window_bounds = array<i64: 32, 32>}, {pipeline_mode = #tpu.pipeline_mode<synchronous>, transform_indices = @transform_3, window_bounds = array<i64: 32, 64>}, {pipeline_mode = #tpu.pipeline_mode<synchronous>, transform_indices = @transform_4, window_bounds = array<i64: 64, 32>}, {pipeline_mode = #tpu.pipeline_mode<synchronous>, transform_indices = @transform_5, window_bounds = array<i64: 32, 32>}, {pipeline_mode = #tpu.pipeline_mode<synchronous>, transform_indices = @transform_6, window_bounds = array<i64: 32, 128>}, {pipeline_mode = #tpu.pipeline_mode<synchronous>, transform_indices = @transform_7, window_bounds = array<i64: 16, 128>}, {pipeline_mode = #tpu.pipeline_mode<synchronous>, transform_indices = @transform_8, window_bounds = array<i64: 8, 128>}]} {
    %0 = tpu.iota {dimensions = array<i32: 2>} : vector<2x1x8xi32>
    %1 = tpu.iota {dimensions = array<i32: 0>} : vector<2x1x8xi32>
    %c0_i32 = arith.constant 0 : i32
    %2 = vector.broadcast %c0_i32 : i32 to vector<2x1x8xi32>
    %c0_i32_0 = arith.constant 0 : i32
    %3 = vector.broadcast %c0_i32_0 : i32 to vector<2x1x8xi32>
    %4 = arith.cmpi eq, %1, %3 : vector<2x1x8xi32>
    %c0 = arith.constant 0 : index
    %5 = memref.load %arg1[%c0] : memref<2xi32, #tpu.memory_space<smem>>
    %6 = vector.broadcast %5 : i32 to vector<2x1x8xi32>
    %7 = arith.select %4, %6, %2 : vector<2x1x8xi1>, vector<2x1x8xi32>
    %c1_i32 = arith.constant 1 : i32
    %8 = vector.broadcast %c1_i32 : i32 to vector<2x1x8xi32>
    %9 = arith.cmpi eq, %1, %8 : vector<2x1x8xi32>
    %c1 = arith.constant 1 : index
    %10 = memref.load %arg1[%c1] : memref<2xi32, #tpu.memory_space<smem>>
    %11 = vector.broadcast %10 : i32 to vector<2x1x8xi32>
    %12 = arith.select %9, %11, %7 : vector<2x1x8xi1>, vector<2x1x8xi32>
    %13 = arith.cmpi slt, %0, %12 : vector<2x1x8xi32>
    %cst = arith.constant 0.000000e+00 : f32
    %cst_1 = arith.constant -1.000000e+09 : f32
    %14 = vector.broadcast %cst : f32 to vector<2x1x8xf32>
    %15 = vector.broadcast %cst_1 : f32 to vector<2x1x8xf32>
    %16 = arith.select %13, %14, %15 : vector<2x1x8xi1>, vector<2x1x8xf32>
    %c0_2 = arith.constant 0 : index
    %c0_3 = arith.constant 0 : index
    %17 = vector.load %arg2[%c0_2, %c0_3] : memref<16x32xf32, #tpu.memory_space<vmem>>, vector<16x32xf32>
    %c0_4 = arith.constant 0 : index
    %c0_5 = arith.constant 0 : index
    %18 = vector.load %arg9[%c0_4, %c0_5] : memref<16x128xf32, #tpu.memory_space<vmem>>, vector<1x32xf32>
    %c1_6 = arith.constant 1 : index
    %c0_7 = arith.constant 0 : index
    %19 = vector.load %arg9[%c1_6, %c0_7] : memref<16x128xf32, #tpu.memory_space<vmem>>, vector<1x32xf32>
    %cst_8 = arith.constant dense<0.000000e+00> : vector<16xf32>
    %20 = vector.multi_reduction <add>, %17, %cst_8 [1] : vector<16x32xf32> to vector<16xf32>
    %21 = vector.shape_cast %20 : vector<16xf32> to vector<16x1xf32>
    %cst_9 = arith.constant 3.200000e+01 : f32
    %22 = vector.broadcast %cst_9 : f32 to vector<16x1xf32>
    %23 = arith.divf %21, %22 : vector<16x1xf32>
    %24 = vector.broadcast %23 : vector<16x1xf32> to vector<16x32xf32>
    %25 = arith.subf %17, %24 : vector<16x32xf32>
    %26 = arith.mulf %25, %25 : vector<16x32xf32>
    %cst_10 = arith.constant dense<0.000000e+00> : vector<16xf32>
    %27 = vector.multi_reduction <add>, %26, %cst_10 [1] : vector<16x32xf32> to vector<16xf32>
    %28 = vector.shape_cast %27 : vector<16xf32> to vector<16x1xf32>
    %cst_11 = arith.constant 3.200000e+01 : f32
    %29 = vector.broadcast %cst_11 : f32 to vector<16x1xf32>
    %30 = arith.divf %28, %29 : vector<16x1xf32>
    %31 = vector.broadcast %23 : vector<16x1xf32> to vector<16x32xf32>
    %32 = arith.subf %17, %31 : vector<16x32xf32>
    %cst_12 = arith.constant 9.99999996E-13 : f32
    %33 = vector.broadcast %cst_12 : f32 to vector<16x1xf32>
    %34 = arith.addf %30, %33 : vector<16x1xf32>
    %35 = math.rsqrt %34 : vector<16x1xf32>
    %36 = vector.broadcast %35 : vector<16x1xf32> to vector<16x32xf32>
    %37 = arith.mulf %32, %36 : vector<16x32xf32>
    %38 = vector.broadcast %18 : vector<1x32xf32> to vector<16x32xf32>
    %39 = arith.mulf %37, %38 : vector<16x32xf32>
    %40 = vector.broadcast %19 : vector<1x32xf32> to vector<16x32xf32>
    %41 = arith.addf %39, %40 : vector<16x32xf32>
    %42 = arith.truncf %41 : vector<16x32xf32> to vector<16x32xbf16>
    %c0_13 = arith.constant 0 : index
    %c0_14 = arith.constant 0 : index
    %43 = vector.load %arg3[%c0_13, %c0_14] : memref<32x96xbf16, #tpu.memory_space<vmem>>, vector<32x96xbf16>
    %cst_15 = arith.constant dense<0.000000e+00> : vector<16x96xf32>
    %44 = tpu.matmul %42, %43, %cst_15 {dimension_numbers = #tpu.dot_dimension_numbers<[1], [0], [0], [1], [0, 0, 1, 1], [], []>} : vector<16x32xbf16>, vector<32x96xbf16>, vector<16x96xf32> -> vector<16x96xf32>
    %c2 = arith.constant 2 : index
    %c0_16 = arith.constant 0 : index
    %45 = vector.load %arg9[%c2, %c0_16] : memref<16x128xf32, #tpu.memory_space<vmem>>, vector<1x96xf32>
    %46 = vector.broadcast %45 : vector<1x96xf32> to vector<16x96xf32>
    %47 = arith.addf %44, %46 : vector<16x96xf32>
    %48 = vector.shape_cast %47 : vector<16x96xf32> to vector<2x8x96xf32>
    %49 = vector.extract_strided_slice %48 {offsets = [0, 0, 0], sizes = [2, 8, 16], strides = [1, 1, 1]} : vector<2x8x96xf32> to vector<2x8x16xf32>
    %50 = arith.truncf %49 : vector<2x8x16xf32> to vector<2x8x16xbf16>
    %51 = vector.extract_strided_slice %48 {offsets = [0, 0, 32], sizes = [2, 8, 16], strides = [1, 1, 1]} : vector<2x8x96xf32> to vector<2x8x16xf32>
    %52 = arith.truncf %51 : vector<2x8x16xf32> to vector<2x8x16xbf16>
    %53 = vector.extract_strided_slice %48 {offsets = [0, 0, 64], sizes = [2, 8, 16], strides = [1, 1, 1]} : vector<2x8x96xf32> to vector<2x8x16xf32>
    %54 = arith.truncf %53 : vector<2x8x16xf32> to vector<2x8x16xbf16>
    "tpu.trace_start"() <{level = 10 : i32, message = "bqd,bkd->bqk"}> : () -> ()
    %cst_17 = arith.constant dense<0.000000e+00> : vector<2x8x8xf32>
    %55 = tpu.matmul %50, %52, %cst_17 {dimension_numbers = #tpu.dot_dimension_numbers<[2], [2], [1], [1], [0, 0, 0, 1, 1, 1], [0], [0]>} : vector<2x8x16xbf16>, vector<2x8x16xbf16>, vector<2x8x8xf32> -> vector<2x8x8xf32>
    "tpu.trace_stop"() : () -> ()
    %cst_18 = arith.constant 2.500000e-01 : f32
    %56 = vector.broadcast %cst_18 : f32 to vector<2x8x8xf32>
    %57 = arith.mulf %55, %56 : vector<2x8x8xf32>
    %58 = vector.broadcast %16 : vector<2x1x8xf32> to vector<2x8x8xf32>
    %59 = arith.addf %57, %58 : vector<2x8x8xf32>
    %cst_19 = arith.constant dense<0xFF800000> : vector<2x8xf32>
    %60 = vector.multi_reduction <maximumf>, %59, %cst_19 [2] : vector<2x8x8xf32> to vector<2x8xf32>
    %61 = vector.shape_cast %60 : vector<2x8xf32> to vector<2x8x1xf32>
    %62 = vector.broadcast %61 : vector<2x8x1xf32> to vector<2x8x8xf32>
    %63 = arith.subf %59, %62 : vector<2x8x8xf32>
    %64 = math.exp %63 : vector<2x8x8xf32>
    %cst_20 = arith.constant dense<0.000000e+00> : vector<2x8xf32>
    %65 = vector.multi_reduction <add>, %64, %cst_20 [2] : vector<2x8x8xf32> to vector<2x8xf32>
    %66 = vector.shape_cast %65 : vector<2x8xf32> to vector<2x8x1xf32>
    %67 = tpu.reciprocal %66 {approx = true} : vector<2x8x1xf32> -> vector<2x8x1xf32>
    %68 = vector.broadcast %67 : vector<2x8x1xf32> to vector<2x8x8xf32>
    %69 = arith.mulf %64, %68 : vector<2x8x8xf32>
    %70 = arith.truncf %69 : vector<2x8x8xf32> to vector<2x8x8xbf16>
    "tpu.trace_start"() <{level = 10 : i32, message = "bqk,bkd->bqd"}> : () -> ()
    %cst_21 = arith.constant dense<0.000000e+00> : vector<2x8x16xf32>
    %71 = tpu.matmul %70, %54, %cst_21 {dimension_numbers = #tpu.dot_dimension_numbers<[2], [1], [1], [2], [0, 0, 0, 1, 1, 2], [0], [0]>} : vector<2x8x8xbf16>, vector<2x8x16xbf16>, vector<2x8x16xf32> -> vector<2x8x16xf32>
    "tpu.trace_stop"() : () -> ()
    %72 = vector.extract_strided_slice %48 {offsets = [0, 0, 16], sizes = [2, 8, 16], strides = [1, 1, 1]} : vector<2x8x96xf32> to vector<2x8x16xf32>
    %73 = arith.truncf %72 : vector<2x8x16xf32> to vector<2x8x16xbf16>
    %74 = vector.extract_strided_slice %48 {offsets = [0, 0, 48], sizes = [2, 8, 16], strides = [1, 1, 1]} : vector<2x8x96xf32> to vector<2x8x16xf32>
    %75 = arith.truncf %74 : vector<2x8x16xf32> to vector<2x8x16xbf16>
    %76 = vector.extract_strided_slice %48 {offsets = [0, 0, 80], sizes = [2, 8, 16], strides = [1, 1, 1]} : vector<2x8x96xf32> to vector<2x8x16xf32>
    %77 = arith.truncf %76 : vector<2x8x16xf32> to vector<2x8x16xbf16>
    "tpu.trace_start"() <{level = 10 : i32, message = "bqd,bkd->bqk"}> : () -> ()
    %cst_22 = arith.constant dense<0.000000e+00> : vector<2x8x8xf32>
    %78 = tpu.matmul %73, %75, %cst_22 {dimension_numbers = #tpu.dot_dimension_numbers<[2], [2], [1], [1], [0, 0, 0, 1, 1, 1], [0], [0]>} : vector<2x8x16xbf16>, vector<2x8x16xbf16>, vector<2x8x8xf32> -> vector<2x8x8xf32>
    "tpu.trace_stop"() : () -> ()
    %cst_23 = arith.constant 2.500000e-01 : f32
    %79 = vector.broadcast %cst_23 : f32 to vector<2x8x8xf32>
    %80 = arith.mulf %78, %79 : vector<2x8x8xf32>
    %81 = vector.broadcast %16 : vector<2x1x8xf32> to vector<2x8x8xf32>
    %82 = arith.addf %80, %81 : vector<2x8x8xf32>
    %cst_24 = arith.constant dense<0xFF800000> : vector<2x8xf32>
    %83 = vector.multi_reduction <maximumf>, %82, %cst_24 [2] : vector<2x8x8xf32> to vector<2x8xf32>
    %84 = vector.shape_cast %83 : vector<2x8xf32> to vector<2x8x1xf32>
    %85 = vector.broadcast %84 : vector<2x8x1xf32> to vector<2x8x8xf32>
    %86 = arith.subf %82, %85 : vector<2x8x8xf32>
    %87 = math.exp %86 : vector<2x8x8xf32>
    %cst_25 = arith.constant dense<0.000000e+00> : vector<2x8xf32>
    %88 = vector.multi_reduction <add>, %87, %cst_25 [2] : vector<2x8x8xf32> to vector<2x8xf32>
    %89 = vector.shape_cast %88 : vector<2x8xf32> to vector<2x8x1xf32>
    %90 = tpu.reciprocal %89 {approx = true} : vector<2x8x1xf32> -> vector<2x8x1xf32>
    %91 = vector.broadcast %90 : vector<2x8x1xf32> to vector<2x8x8xf32>
    %92 = arith.mulf %87, %91 : vector<2x8x8xf32>
    %93 = arith.truncf %92 : vector<2x8x8xf32> to vector<2x8x8xbf16>
    "tpu.trace_start"() <{level = 10 : i32, message = "bqk,bkd->bqd"}> : () -> ()
    %cst_26 = arith.constant dense<0.000000e+00> : vector<2x8x16xf32>
    %94 = tpu.matmul %93, %77, %cst_26 {dimension_numbers = #tpu.dot_dimension_numbers<[2], [1], [1], [2], [0, 0, 0, 1, 1, 2], [0], [0]>} : vector<2x8x8xbf16>, vector<2x8x16xbf16>, vector<2x8x16xf32> -> vector<2x8x16xf32>
    "tpu.trace_stop"() : () -> ()
    %95 = tpu.concatenate %71, %94 in 2 : vector<2x8x16xf32>, vector<2x8x16xf32> -> vector<2x8x32xf32>
    %96 = vector.shape_cast %95 : vector<2x8x32xf32> to vector<16x32xf32>
    %97 = arith.truncf %96 : vector<16x32xf32> to vector<16x32xbf16>
    %c0_27 = arith.constant 0 : index
    %c0_28 = arith.constant 0 : index
    %98 = vector.load %arg4[%c0_27, %c0_28] : memref<32x32xbf16, #tpu.memory_space<vmem>>, vector<32x32xbf16>
    %cst_29 = arith.constant dense<0.000000e+00> : vector<16x32xf32>
    %99 = tpu.matmul %97, %98, %cst_29 {dimension_numbers = #tpu.dot_dimension_numbers<[1], [0], [0], [1], [0, 0, 1, 1], [], []>} : vector<16x32xbf16>, vector<32x32xbf16>, vector<16x32xf32> -> vector<16x32xf32>
    %c3 = arith.constant 3 : index
    %c0_30 = arith.constant 0 : index
    %100 = vector.load %arg9[%c3, %c0_30] : memref<16x128xf32, #tpu.memory_space<vmem>>, vector<1x32xf32>
    %101 = vector.broadcast %100 : vector<1x32xf32> to vector<16x32xf32>
    %102 = arith.addf %99, %101 : vector<16x32xf32>
    %103 = arith.addf %41, %102 : vector<16x32xf32>
    %c4 = arith.constant 4 : index
    %c0_31 = arith.constant 0 : index
    %104 = vector.load %arg9[%c4, %c0_31] : memref<16x128xf32, #tpu.memory_space<vmem>>, vector<1x32xf32>
    %c5 = arith.constant 5 : index
    %c0_32 = arith.constant 0 : index
    %105 = vector.load %arg9[%c5, %c0_32] : memref<16x128xf32, #tpu.memory_space<vmem>>, vector<1x32xf32>
    %cst_33 = arith.constant dense<0.000000e+00> : vector<16xf32>
    %106 = vector.multi_reduction <add>, %103, %cst_33 [1] : vector<16x32xf32> to vector<16xf32>
    %107 = vector.shape_cast %106 : vector<16xf32> to vector<16x1xf32>
    %cst_34 = arith.constant 3.200000e+01 : f32
    %108 = vector.broadcast %cst_34 : f32 to vector<16x1xf32>
    %109 = arith.divf %107, %108 : vector<16x1xf32>
    %110 = vector.broadcast %109 : vector<16x1xf32> to vector<16x32xf32>
    %111 = arith.subf %103, %110 : vector<16x32xf32>
    %112 = arith.mulf %111, %111 : vector<16x32xf32>
    %cst_35 = arith.constant dense<0.000000e+00> : vector<16xf32>
    %113 = vector.multi_reduction <add>, %112, %cst_35 [1] : vector<16x32xf32> to vector<16xf32>
    %114 = vector.shape_cast %113 : vector<16xf32> to vector<16x1xf32>
    %cst_36 = arith.constant 3.200000e+01 : f32
    %115 = vector.broadcast %cst_36 : f32 to vector<16x1xf32>
    %116 = arith.divf %114, %115 : vector<16x1xf32>
    %117 = vector.broadcast %109 : vector<16x1xf32> to vector<16x32xf32>
    %118 = arith.subf %103, %117 : vector<16x32xf32>
    %cst_37 = arith.constant 9.99999996E-13 : f32
    %119 = vector.broadcast %cst_37 : f32 to vector<16x1xf32>
    %120 = arith.addf %116, %119 : vector<16x1xf32>
    %121 = math.rsqrt %120 : vector<16x1xf32>
    %122 = vector.broadcast %121 : vector<16x1xf32> to vector<16x32xf32>
    %123 = arith.mulf %118, %122 : vector<16x32xf32>
    %124 = vector.broadcast %104 : vector<1x32xf32> to vector<16x32xf32>
    %125 = arith.mulf %123, %124 : vector<16x32xf32>
    %126 = vector.broadcast %105 : vector<1x32xf32> to vector<16x32xf32>
    %127 = arith.addf %125, %126 : vector<16x32xf32>
    %128 = arith.truncf %127 : vector<16x32xf32> to vector<16x32xbf16>
    %c0_38 = arith.constant 0 : index
    %c0_39 = arith.constant 0 : index
    %129 = vector.load %arg5[%c0_38, %c0_39] : memref<32x64xbf16, #tpu.memory_space<vmem>>, vector<32x64xbf16>
    %cst_40 = arith.constant dense<0.000000e+00> : vector<16x64xf32>
    %130 = tpu.matmul %128, %129, %cst_40 {dimension_numbers = #tpu.dot_dimension_numbers<[1], [0], [0], [1], [0, 0, 1, 1], [], []>} : vector<16x32xbf16>, vector<32x64xbf16>, vector<16x64xf32> -> vector<16x64xf32>
    %c6 = arith.constant 6 : index
    %c0_41 = arith.constant 0 : index
    %131 = vector.load %arg9[%c6, %c0_41] : memref<16x128xf32, #tpu.memory_space<vmem>>, vector<1x64xf32>
    %132 = vector.broadcast %131 : vector<1x64xf32> to vector<16x64xf32>
    %133 = arith.addf %130, %132 : vector<16x64xf32>
    %cst_42 = arith.constant 5.000000e-01 : f32
    %134 = vector.broadcast %cst_42 : f32 to vector<16x64xf32>
    %135 = arith.mulf %134, %133 : vector<16x64xf32>
    %cst_43 = arith.constant 4.471500e-02 : f32
    %136 = vector.broadcast %cst_43 : f32 to vector<16x64xf32>
    %137 = arith.mulf %136, %133 : vector<16x64xf32>
    %138 = arith.mulf %137, %133 : vector<16x64xf32>
    %139 = arith.mulf %138, %133 : vector<16x64xf32>
    %140 = arith.addf %133, %139 : vector<16x64xf32>
    %cst_44 = arith.constant 0.797884583 : f32
    %141 = vector.broadcast %cst_44 : f32 to vector<16x64xf32>
    %142 = arith.mulf %141, %140 : vector<16x64xf32>
    %143 = math.tanh %142 : vector<16x64xf32>
    %cst_45 = arith.constant 1.000000e+00 : f32
    %144 = vector.broadcast %cst_45 : f32 to vector<16x64xf32>
    %145 = arith.addf %144, %143 : vector<16x64xf32>
    %146 = arith.mulf %135, %145 : vector<16x64xf32>
    %147 = arith.truncf %146 : vector<16x64xf32> to vector<16x64xbf16>
    %c0_46 = arith.constant 0 : index
    %c0_47 = arith.constant 0 : index
    %148 = vector.load %arg6[%c0_46, %c0_47] : memref<64x32xbf16, #tpu.memory_space<vmem>>, vector<64x32xbf16>
    %cst_48 = arith.constant dense<0.000000e+00> : vector<16x32xf32>
    %149 = tpu.matmul %147, %148, %cst_48 {dimension_numbers = #tpu.dot_dimension_numbers<[1], [0], [0], [1], [0, 0, 1, 1], [], []>} : vector<16x64xbf16>, vector<64x32xbf16>, vector<16x32xf32> -> vector<16x32xf32>
    %c7 = arith.constant 7 : index
    %c0_49 = arith.constant 0 : index
    %150 = vector.load %arg9[%c7, %c0_49] : memref<16x128xf32, #tpu.memory_space<vmem>>, vector<1x32xf32>
    %151 = vector.broadcast %150 : vector<1x32xf32> to vector<16x32xf32>
    %152 = arith.addf %149, %151 : vector<16x32xf32>
    %153 = arith.addf %127, %152 : vector<16x32xf32>
    %c8 = arith.constant 8 : index
    %c0_50 = arith.constant 0 : index
    %154 = vector.load %arg9[%c8, %c0_50] : memref<16x128xf32, #tpu.memory_space<vmem>>, vector<1x32xf32>
    %c9 = arith.constant 9 : index
    %c0_51 = arith.constant 0 : index
    %155 = vector.load %arg9[%c9, %c0_51] : memref<16x128xf32, #tpu.memory_space<vmem>>, vector<1x32xf32>
    %cst_52 = arith.constant dense<0.000000e+00> : vector<16xf32>
    %156 = vector.multi_reduction <add>, %153, %cst_52 [1] : vector<16x32xf32> to vector<16xf32>
    %157 = vector.shape_cast %156 : vector<16xf32> to vector<16x1xf32>
    %cst_53 = arith.constant 3.200000e+01 : f32
    %158 = vector.broadcast %cst_53 : f32 to vector<16x1xf32>
    %159 = arith.divf %157, %158 : vector<16x1xf32>
    %160 = vector.broadcast %159 : vector<16x1xf32> to vector<16x32xf32>
    %161 = arith.subf %153, %160 : vector<16x32xf32>
    %162 = arith.mulf %161, %161 : vector<16x32xf32>
    %cst_54 = arith.constant dense<0.000000e+00> : vector<16xf32>
    %163 = vector.multi_reduction <add>, %162, %cst_54 [1] : vector<16x32xf32> to vector<16xf32>
    %164 = vector.shape_cast %163 : vector<16xf32> to vector<16x1xf32>
    %cst_55 = arith.constant 3.200000e+01 : f32
    %165 = vector.broadcast %cst_55 : f32 to vector<16x1xf32>
    %166 = arith.divf %164, %165 : vector<16x1xf32>
    %167 = vector.broadcast %159 : vector<16x1xf32> to vector<16x32xf32>
    %168 = arith.subf %153, %167 : vector<16x32xf32>
    %cst_56 = arith.constant 9.99999996E-13 : f32
    %169 = vector.broadcast %cst_56 : f32 to vector<16x1xf32>
    %170 = arith.addf %166, %169 : vector<16x1xf32>
    %171 = math.rsqrt %170 : vector<16x1xf32>
    %172 = vector.broadcast %171 : vector<16x1xf32> to vector<16x32xf32>
    %173 = arith.mulf %168, %172 : vector<16x32xf32>
    %174 = vector.broadcast %154 : vector<1x32xf32> to vector<16x32xf32>
    %175 = arith.mulf %173, %174 : vector<16x32xf32>
    %176 = vector.broadcast %155 : vector<1x32xf32> to vector<16x32xf32>
    %177 = arith.addf %175, %176 : vector<16x32xf32>
    %178 = tpu.iota {dimensions = array<i32: 0>} : vector<8x16xi32>
    %179 = tpu.iota {dimensions = array<i32: 1>} : vector<8x16xi32>
    %c8_i32 = arith.constant 8 : i32
    %180 = vector.broadcast %c8_i32 : i32 to vector<8x16xi32>
    %181 = arith.muli %178, %180 : vector<8x16xi32>
    %182 = arith.cmpi eq, %179, %181 : vector<8x16xi32>
    %c2_i32 = arith.constant 2 : i32
    %183 = vector.broadcast %c2_i32 : i32 to vector<8x16xi32>
    %184 = arith.cmpi slt, %178, %183 : vector<8x16xi32>
    %185 = arith.andi %182, %184 : vector<8x16xi1>
    %186 = arith.extui %185 : vector<8x16xi1> to vector<8x16xi32>
    %187 = arith.sitofp %186 : vector<8x16xi32> to vector<8x16xf32>
    %188 = arith.truncf %187 : vector<8x16xf32> to vector<8x16xbf16>
    %189 = arith.truncf %177 : vector<16x32xf32> to vector<16x32xbf16>
    %cst_57 = arith.constant dense<0.000000e+00> : vector<8x32xf32>
    %190 = tpu.matmul %188, %189, %cst_57 {dimension_numbers = #tpu.dot_dimension_numbers<[1], [0], [0], [1], [0, 0, 1, 1], [], []>} : vector<8x16xbf16>, vector<16x32xbf16>, vector<8x32xf32> -> vector<8x32xf32>
    %191 = arith.truncf %190 : vector<8x32xf32> to vector<8x32xbf16>
    %c0_58 = arith.constant 0 : index
    %c0_59 = arith.constant 0 : index
    %192 = vector.load %arg7[%c0_58, %c0_59] : memref<32x32xbf16, #tpu.memory_space<vmem>>, vector<32x32xbf16>
    %cst_60 = arith.constant dense<0.000000e+00> : vector<8x32xf32>
    %193 = tpu.matmul %191, %192, %cst_60 {dimension_numbers = #tpu.dot_dimension_numbers<[1], [0], [0], [1], [0, 0, 1, 1], [], []>} : vector<8x32xbf16>, vector<32x32xbf16>, vector<8x32xf32> -> vector<8x32xf32>
    %c10 = arith.constant 10 : index
    %c0_61 = arith.constant 0 : index
    %194 = vector.load %arg9[%c10, %c0_61] : memref<16x128xf32, #tpu.memory_space<vmem>>, vector<1x32xf32>
    %195 = vector.broadcast %194 : vector<1x32xf32> to vector<8x32xf32>
    %196 = arith.addf %193, %195 : vector<8x32xf32>
    %197 = math.tanh %196 : vector<8x32xf32>
    %198 = arith.truncf %197 : vector<8x32xf32> to vector<8x32xbf16>
    %c0_62 = arith.constant 0 : index
    %c0_63 = arith.constant 0 : index
    %199 = vector.load %arg8[%c0_62, %c0_63] : memref<32x128xbf16, #tpu.memory_space<vmem>>, vector<32x128xbf16>
    %cst_64 = arith.constant dense<0.000000e+00> : vector<8x128xf32>
    %200 = tpu.matmul %198, %199, %cst_64 {dimension_numbers = #tpu.dot_dimension_numbers<[1], [0], [0], [1], [0, 0, 1, 1], [], []>} : vector<8x32xbf16>, vector<32x128xbf16>, vector<8x128xf32> -> vector<8x128xf32>
    %c11 = arith.constant 11 : index
    %c0_65 = arith.constant 0 : index
    %201 = vector.load %arg9[%c11, %c0_65] : memref<16x128xf32, #tpu.memory_space<vmem>>, vector<1x128xf32>
    %202 = vector.broadcast %201 : vector<1x128xf32> to vector<8x128xf32>
    %203 = arith.addf %200, %202 : vector<8x128xf32>
    %c0_66 = arith.constant 0 : index
    %c0_67 = arith.constant 0 : index
    %204 = vector.load %arg10[%c0_66, %c0_67] : memref<8x128xf32, #tpu.memory_space<vmem>>, vector<8x128xf32>
    tpu.vector_store %arg10[%c0_66, %c0_67], %203 {strides = array<i32>} : memref<8x128xf32, #tpu.memory_space<vmem>>, vector<8x128xf32>,
    return
  }
  func.func @transform_0(%arg0: i32, %arg1: memref<2xi32, #tpu.memory_space<smem>>) -> (i32, i32) {
    %c0_i32 = arith.constant 0 : i32
    %c0_i32_0 = arith.constant 0 : i32
    %c0_i32_1 = arith.constant 0 : i32
    return %c0_i32, %c0_i32_0 : i32, i32
  }
  func.func @transform_1(%arg0: i32, %arg1: memref<2xi32, #tpu.memory_space<smem>>) -> (i32, i32) {
    %c0_i32 = arith.constant 0 : i32
    %c0_i32_0 = arith.constant 0 : i32
    %c0_i32_1 = arith.constant 0 : i32
    return %c0_i32, %c0_i32_0 : i32, i32
  }
  func.func @transform_2(%arg0: i32, %arg1: memref<2xi32, #tpu.memory_space<smem>>) -> (i32, i32) {
    %c0_i32 = arith.constant 0 : i32
    %c0_i32_0 = arith.constant 0 : i32
    %c0_i32_1 = arith.constant 0 : i32
    return %c0_i32, %c0_i32_0 : i32, i32
  }
  func.func @transform_3(%arg0: i32, %arg1: memref<2xi32, #tpu.memory_space<smem>>) -> (i32, i32) {
    %c0_i32 = arith.constant 0 : i32
    %c0_i32_0 = arith.constant 0 : i32
    %c0_i32_1 = arith.constant 0 : i32
    return %c0_i32, %c0_i32_0 : i32, i32
  }
  func.func @transform_4(%arg0: i32, %arg1: memref<2xi32, #tpu.memory_space<smem>>) -> (i32, i32) {
    %c0_i32 = arith.constant 0 : i32
    %c0_i32_0 = arith.constant 0 : i32
    %c0_i32_1 = arith.constant 0 : i32
    return %c0_i32, %c0_i32_0 : i32, i32
  }
  func.func @transform_5(%arg0: i32, %arg1: memref<2xi32, #tpu.memory_space<smem>>) -> (i32, i32) {
    %c0_i32 = arith.constant 0 : i32
    %c0_i32_0 = arith.constant 0 : i32
    %c0_i32_1 = arith.constant 0 : i32
    return %c0_i32, %c0_i32_0 : i32, i32
  }
  func.func @transform_6(%arg0: i32, %arg1: memref<2xi32, #tpu.memory_space<smem>>) -> (i32, i32) {
    %c0_i32 = arith.constant 0 : i32
    %c0_i32_0 = arith.constant 0 : i32
    %c0_i32_1 = arith.constant 0 : i32
    return %c0_i32, %c0_i32_0 : i32, i32
  }
  func.func @transform_7(%arg0: i32, %arg1: memref<2xi32, #tpu.memory_space<smem>>) -> (i32, i32) {
    %c0_i32 = arith.constant 0 : i32
    %c0_i32_0 = arith.constant 0 : i32
    %c0_i32_1 = arith.constant 0 : i32
    return %c0_i32, %c0_i32_0 : i32, i32
  }
  func.func @transform_8(%arg0: i32, %arg1: memref<2xi32, #tpu.memory_space<smem>>) -> (i32, i32) {
    %c0_i32 = arith.constant 0 : i32
    %c0_i32_0 = arith.constant 0 : i32
    %c0_i32_1 = arith.constant 0 : i32
    return %c0_i32, %c0_i32_0 : i32, i32
  }
}

</mosaic_0001>

<bundles_post_ra>
// kernel: tpu_custom_call.1
= control target key start
LH: loop header
LB: loop body
LE: loop exit
PB: predicated region body
PF: predicated region fallthrough
CT: control target
= control target key end

     0   :  { %s1567_s30 = smov [#allocation3]   ;;  %s1843_s0 = inlined_call_operand.hbm [shape: s32[2], index: 0, kind: input, shape index: {}]   ;;  %s1844_s1 = inlined_call_operand.vmem [shape: f32[16,32], index: 1, kind: input, shape index: {}]   ;;  %s1845_s2 = inlined_call_operand.vmem [shape: bf16[32,96], index: 2, kind: input, shape index: {}]   ;;  %s1846_s3 = inlined_call_operand.vmem [shape: bf16[32,32], index: 3, kind: input, shape index: {}]   ;;  %s1847_s4 = inlined_call_operand.hbm [shape: bf16[32,64], index: 4, kind: input, shape index: {}]   ;;  %s1848_s5 = inlined_call_operand.vmem [shape: bf16[64,32], index: 5, kind: input, shape index: {}]   ;;  %s1849_s6 = inlined_call_operand.hbm [shape: bf16[32,32], index: 6, kind: input, shape index: {}]   ;;  %s1850_s7 = inlined_call_operand.hbm [shape: bf16[32,128], index: 7, kind: input, shape index: {}]   ;;  %s1851_s8 = inlined_call_operand.hbm [shape: f32[16,128], index: 8, kind: input, shape index: {}]   ;;  %s1852_s9 = inlined_call_operand.hbm [shape: f32[8,128], index: 9, kind: output, shape index: {}]  }
   0x1   :  { %15 = dma.hbm_to_smem %s1843_s0, 16, %s1567_s30, [#allocation2] }
   0x2   :  { %1557 = dma.done.wait [#allocation2], 16 }
   0x3   :  { %1558 = vsyncadd [#allocation2], 4294967280 }
   0x4   :  { %17 = sfence }
   0x5   :  { %18 = vsyncpa [#allocation5], 0 }
   0x6   :  { %19 = vsyncpa [#allocation8], 0 }
   0x7   :  { %20 = vsyncpa [#allocation11], 0 }
   0x8   :  { %21 = vsyncpa [#allocation6], 0  ;;  %s1568_s12 = smov [#allocation7]   ;;  %s1569_s14 = smov [#allocation4]  }
   0x9   :  { %s47_s13 = sshll.u32 %s1568_s12, 4  ;;  %s33_s15 = sshll.u32 %s1569_s14, 4  ;;  %s48_s13 = int_to_ptr.vmem [resolvable:$true] %s47_s13  ;;  %s34_s15 = int_to_ptr.vmem [resolvable:$true] %s33_s15 }
   0xa   :  { %s1465_s16 = scalar_lea.vmem %s48_s13, 256  ;;  %p1470_p1 = scmp.lt.s32.totalorder %s48_s13, %s48_s13 }
   0xb   :  { %p1466_p0 = scmp.ne.s32.totalorder %s48_s13, %s1465_s16  ;;  %p1471_p2 = scmp.lt.s32.totalorder %s1465_s16, %s1465_s16 }
   0xd   :  { %p1472_p3 = por %p1471_p2, %p1470_p1 }
   0xf   :  { %p1473_p4 = pnand %p1472_p3, %p1466_p0 }
  0x11   :  { %1476 = shalt.err (!%p1473_p4)
}
  0x12   :  { %s1570_s0 = smov 64   ;;  %s1571_s17 = smov 4  }
  0x13   :  { %53 = dma.hbm_to_vmem [thread:$0]  %s1849_s6, 256, %s48_s13, [#allocation8], %s1570_s0, %s1570_s0, %s1571_s17  }
  0x14   :  { %s1485_s20 = scalar_lea.vmem %s34_s15, 256  ;;  %p1490_p6 = scmp.lt.s32.totalorder %s34_s15, %s34_s15 }
  0x15   :  { %p1486_p5 = scmp.ne.s32.totalorder %s34_s15, %s1485_s20  ;;  %p1491_p7 = scmp.lt.s32.totalorder %s1485_s20, %s1485_s20 }
  0x17   :  { %p1492_p8 = por %p1491_p7, %p1490_p6 }
  0x19   :  { %p1493_p9 = pnand %p1492_p8, %p1486_p5 }
  0x1b   :  { %1496 = shalt.err (!%p1493_p9)
}
  0x1c   :  { %39 = dma.hbm_to_vmem [thread:$0]  %s1847_s4, 256, %s34_s15, [#allocation5], %s1570_s0, %s1570_s0, %s1571_s17  }
  0x1d   :  { %s1572_s23 = smov [#allocation9]   ;;  %s1573_s25 = smov [#allocation10]  }
  0x1e   :  { %s59_s24 = sshll.u32 %s1572_s23, 4  ;;  %s71_s26 = sshll.u32 %s1573_s25, 4  ;;  %s60_s24 = int_to_ptr.vmem [resolvable:$true] %s59_s24  ;;  %s72_s26 = int_to_ptr.vmem [resolvable:$true] %s71_s26 }
  0x1f   :  { %s1505_s6 = scalar_lea.vmem %s60_s24, 256  ;;  %p1510_p11 = scmp.lt.s32.totalorder %s60_s24, %s60_s24 }
  0x20   :  { %p1506_p10 = scmp.ne.s32.totalorder %s60_s24, %s1505_s6  ;;  %p1511_p12 = scmp.lt.s32.totalorder %s1505_s6, %s1505_s6 }
  0x22   :  { %p1512_p13 = por %p1511_p12, %p1510_p11 }
  0x24   :  { %p1513_p0 = pnand %p1512_p13, %p1506_p10 }
  0x26   :  { %1516 = shalt.err (!%p1513_p0)
}
  0x27   :  { %65 = dma.hbm_to_vmem [thread:$0]  %s1850_s7, 256, %s60_s24, [#allocation8], %s1570_s0, %s1570_s0, %s1571_s17  }
  0x28   :  { %s1525_s4 = scalar_lea.vmem %s72_s26, 256  ;;  %p1530_p2 = scmp.lt.s32.totalorder %s72_s26, %s72_s26 }
  0x29   :  { %p1526_p1 = scmp.ne.s32.totalorder %s72_s26, %s1525_s4  ;;  %p1531_p3 = scmp.lt.s32.totalorder %s1525_s4, %s1525_s4 }
  0x2b   :  { %p1532_p4 = por %p1531_p3, %p1530_p2 }
  0x2d   :  { %p1533_p5 = pnand %p1532_p4, %p1526_p1 }
  0x2f   :  { %1536 = shalt.err (!%p1533_p5)
}
  0x30   :  { %s1574_s29 = smov 128   ;;  %s1575_s30 = smov 8  }
  0x31   :  { %77 = dma.hbm_to_vmem [thread:$0]  %s1851_s8, 256, %s72_s26, [#allocation11], %s1574_s29, %s1574_s29, %s1575_s30  }
  0x32   :  { %1559 = dma.done.wait [#allocation5], 256  }
  0x33   :  { %1560 = vsyncadd [#allocation5], 4294967040 }
  0x34   :  { %1561 = dma.done.wait [#allocation8], 512  }
  0x35   :  { %1562 = vsyncadd [#allocation8], 4294966784 }
  0x36   :  { %1563 = dma.done.wait [#allocation11], 256  }
  0x37   :  { %1564 = vsyncadd [#allocation11], 4294967040  ;;  %vm105_vm0 = vcmask 261120   ;;  %v101_v0 = vld [vmem:[%s1844_s1] sm:$0xff]  ;;  %v102_v1 = vld [vmem:[%s1844_s1 + $0x8] sm:$0xff]  ;;  %v1576_v15 = vmov 0.0   ;;  %v91_v47 = vlaneseq }
  0x38   :  { %v106_v2 = vsel %vm105_vm0, %v101_v0, 0.0  ;;  %v109_v3 = vsel %vm105_vm0, %v102_v1, 0.0  ;;  %v1401_v14 = vld [vmem:[%s1845_s2 + $0x8] sm:$0xff]   ;;  %1272 = vmatprep.subr.bf16.mxu0 %v1576_v15  ;;  %vm1577_vm1 = vmmov 0   ;;  %v1402_v16 = vld [vmem:[%s1845_s2] sm:$0xff]   ;;  %1280 = vmatprep.subr.bf16.mxu1 %v1576_v15  ;;  %s1578_s2 = smov 96  }
  0x39   :  { %107 = vadd.xlane.f32.xlu0 %v106_v2  ;;  %1276 = vmatprep.mubr.msk.bf16.mxu0 %vm1577_vm1, %v1576_v15  ;;  %v1192_v25 = vld [vmem:[#allocation10] ss:$0 sm:$0xff]  ;;  %v1193_v29 = vld [vmem:[#allocation10 + $0x1] ss:$0 sm:$0xff]  ;;  %v1194_v34 = vld [vmem:[#allocation10 + $0x2] ss:$0 sm:$0xff] }
  0x3a   :  { %1273 = vmatpush3.bf16.msra.mxu0 %v1401_v14  ;;  %1282 = vmatprep.mubr.msk.bf16.mxu1 %vm1577_vm1, %v1576_v15  ;;  %vm216_vm2 = vcmask 130048   ;;  %v1707_v48 = vshrl.u32 %v91_v47, 7  ;;  %v92_v49 = vand.u32 127, %v91_v47  ;;  %s93_s17 = sld [smem:[#allocation3]]  ;;  %v1579_v55 = vmov -1e+09  }
  0x3b   :  { %1274 = vmatprep.subr.bf16.mxu0 %v1576_v15  ;;  %s1191_s18 = sld [smem:[#allocation3 + $0x1]]  ;;  %vm316_vm6 = vcmask 64512   ;;  %s1580_s19 = smov 80   ;;  %vm346_vm7 = vcmask 1043456   ;;  %vm902_vm8 = vcmask 523264  }
  0x3c   :  { %v991_v50 = vmul.u32 8, %v1707_v48  ;;  %s1581_s20 = smov 112   ;;  %s1583_s25 = smov 16   ;;  %vm993_vm9 = vcmp.lt.s32.totalorder %v1707_v48, 2 }
  0x3d   :  { %110 = vadd.xlane.f32.xlu0 %v109_v3 }
  0x3e   :  { %1275 = vmatpush3.bf16.msra.mxu0 %v1402_v16  ;;  %vm1710_vm3 = vcmp.eq.s32.totalorder %v92_v49, %v991_v50 }
  0x3f   :  { %1286 = vmatprep.subr.bf16.mxu0 %v1576_v15  ;;  %vm1825_vm10 = vmand %vm1710_vm3, %vm993_vm9 }
  0x40   :  { %v94_v52 = vstv %s93_s17 }
  0x41   :  { %vm97_vm4 = vcmp.lt.s32.totalorder %v92_v49, %v94_v52  ;;  %v96_v53 = vstv %s1191_s18 }
  0x42   :  { %v1714_v56 = vsel %vm97_vm4, 0.0, %v1579_v55  ;;  %vm98_vm5 = vcmp.lt.s32.totalorder %v92_v49, %v96_v53 }
  0x43   :  { %v1717_v62 = vsel %vm98_vm5, 0.0, %v1579_v55 }
  0xc2   :  { %v108_v4 = vpop.xlane.xlu0 %107 }
  0xc3   :  { %v113_v5 = vmul.f32 0.03125, %v108_v4 }
  0xc5   :  { %v115_v6 = vsub.f32 %v101_v0, %v113_v5 }
  0xc6   :  { %v111_v7 = vpop.xlane.xlu0 %110 }
  0xc7   :  { %v114_v8 = vmul.f32 0.03125, %v111_v7  ;;  %v117_v9 = vmul.f32 %v115_v6, %v115_v6 }
  0xc9   :  { %v116_v10 = vsub.f32 %v102_v1, %v114_v8  ;;  %v119_v11 = vsel %vm105_vm0, %v117_v9, 0.0 }
  0xca   :  { %120 = vadd.xlane.f32.xlu1 %v119_v11 }
  0xcb   :  { %v118_v12 = vmul.f32 %v116_v10, %v116_v10 }
  0xcd   :  { %v122_v13 = vsel %vm105_vm0, %v118_v12, 0.0 }
  0xce   :  { %123 = vadd.xlane.f32.xlu1 %v122_v13 }
 0x153   :  { %v121_v17 = vpop.xlane.xlu1 %120 }
 0x154   :  { %v125_v18 = vmul.f32 0.03125, %v121_v17 }
 0x156   :  { %v127_v19 = vadd.f32 1e-12, %v125_v18 }
 0x157   :  { %v124_v20 = vpop.xlane.xlu1 %123 }
 0x158   :  { %1415 = vrsqrt.f32 %v127_v19  ;;  %v126_v21 = vmul.f32 0.03125, %v124_v20 }
 0x15a   :  { %v128_v22 = vadd.f32 1e-12, %v126_v21 }
 0x15c   :  { %1417 = vrsqrt.f32 %v128_v22 }
 0x165   :  { %v1416_v23 = vpop.eup %1415 }
 0x166   :  { %v131_v24 = vmul.f32 %v1416_v23, %v115_v6 }
 0x168   :  { %v137_v28 = vmul.f32 %v1192_v25, %v131_v24 }
 0x169   :  { %v1418_v26 = vpop.eup %1417 }
 0x16a   :  { %v132_v27 = vmul.f32 %v1418_v26, %v116_v10  ;;  %v1680_v31 = vadd.f32 %v1193_v29, %v137_v28 }
 0x16c   :  { %v138_v30 = vmul.f32 %v1192_v25, %v132_v27 }
 0x16e   :  { %v1682_v32 = vadd.f32 %v1193_v29, %v138_v30 }
 0x170   :  { %v145_v33 = vpack.c.bf16 %v1682_v32, %v1680_v31 }
 0x172   :  { %1277 = vmatmul.mubr.msk.bf16.vlgmr.msra.gmra.mxu0 %vm105_vm0, %v145_v33 }
 0x173   :  { %1288 = vmatprep.mubr.msk.bf16.mxu0 %vm1577_vm1, %v1576_v15 }
 0x232   :  { %v204_v35 = vpop.f32.mrf.mxu0 }
 0x233   :  { %v205_v36 = vadd.f32 %v1194_v34, %v204_v35 }
 0x234   :  { %v1278_v37 = vpop.f32.mrf.mxu0 }
 0x235   :  { %v1689_v38 = vpack.c.bf16 %v205_v36, %v205_v36 }
 0x236   :  { %v207_v39 = vpop.f32.mrf.mxu0 }
 0x237   :  { %v208_v40 = vadd.f32 %v1194_v34, %v207_v39  ;;  %214 = vrot.lane.b32.xlu0 %v1689_v38, %s1578_s2 }
 0x238   :  { %v1279_v41 = vpop.f32.mrf.mxu0 }
 0x239   :  { %v1692_v42 = vpack.c.bf16 %v208_v40, %v208_v40 }
 0x23b   :  { %264 = vrot.lane.b32.xlu1 %v1692_v42, %s1578_s2 }
 0x2a9   :  { %v215_v43 = vpop.permute.xlu0 %214 }
 0x2aa   :  { %v221_v44 = vsel %vm216_vm2, %v215_v43, 0 }
 0x2ab   :  { %1281 = vmatpush3.bf16.xpose.msra.mxu1 %v221_v44 }
 0x2ac   :  { %1292 = vmatprep.subr.bf16.mxu1 %v1576_v15 }
 0x2ad   :  { %v265_v45 = vpop.permute.xlu1 %264 }
 0x2ae   :  { %v270_v46 = vsel %vm216_vm2, %v265_v45, 0 }
 0x2af   :  { %1287 = vmatpush3.bf16.xpose.msra.mxu0 %v270_v46 }
 0x2b0   :  { %1298 = vmatprep.subr.bf16.mxu0 %v1576_v15 }
 0x2b2   :  { %1283 = vmatmul.mubr.msk.bf16.vlgmr.msra.gmra.mxu1 %vm216_vm2, %v1689_v38 }
 0x2b3   :  { %1294 = vmatprep.mubr.msk.bf16.mxu1 %vm1577_vm1, %v1576_v15 }
 0x2b6   :  { %1289 = vmatmul.mubr.msk.bf16.vlgmr.msra.gmra.mxu0 %vm216_vm2, %v1692_v42 }
 0x2b7   :  { %1300 = vmatprep.mubr.msk.bf16.mxu0 %vm1577_vm1, %v1576_v15 }
 0x372   :  { %v257_v54 = vpop.f32.mrf.mxu1 }
 0x373   :  { %v312_v57 = vmul.f32 0.25, %v257_v54 }
 0x374   :  { %v1284_v58 = vpop.f32.mrf.mxu1 }
 0x375   :  { %v314_v59 = vadd.f32 %v312_v57, %v1714_v56 }
 0x376   :  { %v260_v60 = vpop.f32.mrf.mxu1  ;;  %v306_v61 = vpop.f32.mrf.mxu0 }
 0x377   :  { %v313_v63 = vmul.f32 0.25, %v306_v61  ;;  %v317_v0 = vsel %vm316_vm6, %v314_v59, -inf }
 0x378   :  { %v1285_v1 = vpop.f32.mrf.mxu1  ;;  %v1290_v2 = vpop.f32.mrf.mxu0  ;;  %318 = vmax.xlane.f32.xlu1 %v317_v0 }
 0x379   :  { %v315_v3 = vadd.f32 %v313_v63, %v1717_v62 }
 0x37a   :  { %v309_v4 = vpop.f32.mrf.mxu0 }
 0x37b   :  { %v320_v5 = vsel %vm316_vm6, %v315_v3, -inf }
 0x37c   :  { %v1291_v6 = vpop.f32.mrf.mxu0  ;;  %321 = vmax.xlane.f32.xlu0 %v320_v5 }
 0x389   :  { %390 = vrot.lane.b32.xlu1 %v1692_v42, %s1570_s0 }
 0x38d   :  { %440 = vrot.lane.b32.xlu1 %v1689_v38, %s1580_s19 }
 0x401   :  { %v319_v7 = vpop.xlane.xlu1 %318 }
 0x402   :  { %v323_v8 = vsub.f32 %v314_v59, %v319_v7 }
 0x404   :  { %v325_v9 = vmul.f32 1.442695, %v323_v8 }
 0x405   :  { %v322_v10 = vpop.xlane.xlu0 %321  ;;  %v391_v11 = vpop.permute.xlu1 %390 }
 0x406   :  { %1419 = vpow2.f32 %v325_v9  ;;  %v324_v12 = vsub.f32 %v315_v3, %v322_v10  ;;  %v396_v13 = vsel %vm346_vm7, %v391_v11, 0 }
 0x407   :  { %1299 = vmatpush3.bf16.msra.mxu0 %v396_v13 }
 0x408   :  { %v327_v14 = vmul.f32 1.442695, %v324_v12  ;;  %1310 = vmatprep.subr.bf16.mxu0 %v1576_v15 }
 0x409   :  { %v441_v20 = vpop.permute.xlu1 %440 }
 0x40a   :  { %1421 = vpow2.f32 %v327_v14  ;;  %v446_v29 = vsel %vm216_vm2, %v441_v20, 0 }
 0x413   :  { %v1420_v16 = vpop.eup %1419 }
 0x414   :  { %v329_v17 = vsel %vm316_vm6, %v1420_v16, 0.0 }
 0x415   :  { %330 = vadd.xlane.f32.xlu0 %v329_v17 }
 0x417   :  { %v1422_v18 = vpop.eup %1421 }
 0x418   :  { %v332_v19 = vsel %vm316_vm6, %v1422_v18, 0.0 }
 0x419   :  { %333 = vadd.xlane.f32.xlu1 %v332_v19 }
 0x42a   :  { %490 = vrot.lane.b32.xlu1 %v1692_v42, %s1580_s19 }
 0x42b   :  { %341 = vrot.lane.b32.xlu0 %v1689_v38, %s1570_s0  ;;  %s1582_s0 = smov 48  }
 0x42e   :  { %488 = vrot.lane.b32.xlu1 %v1692_v42, %s1581_s20 }
 0x42f   :  { %438 = vrot.lane.b32.xlu0 %v1689_v38, %s1581_s20 }
 0x49e   :  { %v331_v21 = vpop.xlane.xlu0 %330 }
 0x49f   :  { %1423 = vrcp.f32 %v331_v21  ;;  %v1403_v21 = vld [vmem:[%s1846_s3 + $0x8] sm:$0xff]  }
 0x4a2   :  { %v342_v22 = vpop.permute.xlu0 %341  ;;  %v334_v23 = vpop.xlane.xlu1 %333 }
 0x4a3   :  { %v348_v24 = vsel %vm346_vm7, %v342_v22, 0  ;;  %1425 = vrcp.f32 %v334_v23  ;;  %v1404_v22 = vld [vmem:[%s1846_s3] sm:$0xff]  }
 0x4a4   :  { %1293 = vmatpush3.bf16.msra.mxu1 %v348_v24 }
 0x4a5   :  { %1304 = vmatprep.subr.bf16.mxu1 %v1576_v15 }
 0x4a6   :  { %v491_v33 = vpop.permute.xlu1 %490  ;;  %v439_v36 = vpop.permute.xlu0 %438 }
 0x4a7   :  { %v496_v35 = vsel %vm216_vm2, %v491_v33, 0 }
 0x4aa   :  { %v489_v37 = vpop.permute.xlu1 %488 }
 0x4ac   :  { %v1424_v25 = vpop.eup %1423 }
 0x4ad   :  { %v337_v26 = vmul.f32 %v1424_v25, %v1420_v16 }
 0x4af   :  { %v339_v27 = vpack.c.bf16 %v337_v26, %v337_v26 }
 0x4b0   :  { %v1426_v28 = vpop.eup %1425 }
 0x4b1   :  { %1295 = vmatmul.mubr.msk.bf16.vlgmr.msra.gmra.mxu1 %vm316_vm6, %v339_v27  ;;  %v338_v30 = vmul.f32 %v1426_v28, %v1422_v18 }
 0x4b2   :  { %1305 = vmatpush3.bf16.xpose.msra.mxu1 %v446_v29  ;;  %1306 = vmatprep.mubr.msk.bf16.mxu1 %vm1577_vm1, %v1576_v15 }
 0x4b3   :  { %v340_v34 = vpack.c.bf16 %v338_v30, %v338_v30  ;;  %1316 = vmatprep.subr.bf16.mxu1 %v1576_v15 }
 0x4b5   :  { %1301 = vmatmul.mubr.msk.bf16.vlgmr.msra.gmra.mxu0 %vm316_vm6, %v340_v34 }
 0x4b6   :  { %1311 = vmatpush3.bf16.xpose.msra.mxu0 %v496_v35  ;;  %1312 = vmatprep.mubr.msk.bf16.mxu0 %vm1577_vm1, %v1576_v15 }
 0x4b7   :  { %1322 = vmatprep.subr.bf16.mxu0 %v1576_v15 }
 0x4b9   :  { %1307 = vmatmul.mubr.msk.bf16.vlgmr.msra.gmra.mxu1 %vm216_vm2, %v439_v36 }
 0x4ba   :  { %1318 = vmatprep.mubr.msk.bf16.mxu1 %vm1577_vm1, %v1576_v15 }
 0x4bd   :  { %1313 = vmatmul.mubr.msk.bf16.vlgmr.msra.gmra.mxu0 %vm216_vm2, %v489_v37 }
 0x4be   :  { %1324 = vmatprep.mubr.msk.bf16.mxu0 %vm1577_vm1, %v1576_v15 }
 0x571   :  { %v1752_v39 = vpop.f32.mrf.mxu1 }
 0x573   :  { %v1296_v40 = vpop.f32.mrf.mxu1 }
 0x575   :  { %v387_v41 = vpop.f32.mrf.mxu1  ;;  %v1754_v43 = vpop.f32.mrf.mxu0 }
 0x577   :  { %v1297_v44 = vpop.f32.mrf.mxu1  ;;  %v1302_v45 = vpop.f32.mrf.mxu0 }
 0x578   :  { %v1206_v44 = vld [vmem:[#allocation10 + $0x3] ss:$0 sm:$0xff] }
 0x579   :  { %v435_v46 = vpop.f32.mrf.mxu0  ;;  %v482_v47 = vpop.f32.mrf.mxu1 }
 0x57a   :  { %v538_v49 = vmul.f32 0.25, %v482_v47 }
 0x57b   :  { %v1303_v50 = vpop.f32.mrf.mxu0  ;;  %v1308_v52 = vpop.f32.mrf.mxu1 }
 0x57c   :  { %v540_v53 = vadd.f32 %v538_v49, %v1714_v56 }
 0x57d   :  { %v485_v54 = vpop.f32.mrf.mxu1  ;;  %v532_v55 = vpop.f32.mrf.mxu0 }
 0x57e   :  { %v539_v57 = vmul.f32 0.25, %v532_v55  ;;  %v542_v58 = vsel %vm316_vm6, %v540_v53, -inf }
 0x57f   :  { %543 = vmax.xlane.f32.xlu0 %v542_v58  ;;  %v1309_v59 = vpop.f32.mrf.mxu1  ;;  %v1314_v60 = vpop.f32.mrf.mxu0 }
 0x580   :  { %v541_v61 = vadd.f32 %v539_v57, %v1717_v62 }
 0x581   :  { %v535_v63 = vpop.f32.mrf.mxu0 }
 0x582   :  { %v545_v0 = vsel %vm316_vm6, %v541_v61, -inf }
 0x583   :  { %546 = vmax.xlane.f32.xlu1 %v545_v0  ;;  %v1315_v1 = vpop.f32.mrf.mxu0 }
 0x594   :  { %614 = vrot.lane.b32.xlu1 %v1692_v42, %s1582_s0 }
 0x608   :  { %v544_v2 = vpop.xlane.xlu0 %543 }
 0x609   :  { %v548_v56 = vsub.f32 %v540_v53, %v544_v2  ;;  %v1405_v2 = vld [vmem:[#allocation4 + $0x8] sm:$0xff]  }
 0x60b   :  { %v550_v3 = vmul.f32 1.442695, %v548_v56 }
 0x60c   :  { %v547_v4 = vpop.xlane.xlu1 %546 }
 0x60d   :  { %1427 = vpow2.f32 %v550_v3  ;;  %v549_v5 = vsub.f32 %v541_v61, %v547_v4 }
 0x60f   :  { %v552_v6 = vmul.f32 1.442695, %v549_v5 }
 0x610   :  { %v615_v7 = vpop.permute.xlu1 %614 }
 0x611   :  { %1429 = vpow2.f32 %v552_v6  ;;  %v620_v8 = vsel %vm346_vm7, %v615_v7, 0 }
 0x612   :  { %1323 = vmatpush3.bf16.msra.mxu0 %v620_v8 }
 0x613   :  { %1336 = vmatprep.subr.bf16.mxu0 %v1576_v15 }
 0x61a   :  { %v1428_v62 = vpop.eup %1427 }
 0x61b   :  { %v554_v9 = vsel %vm316_vm6, %v1428_v62, 0.0 }
 0x61c   :  { %555 = vadd.xlane.f32.xlu0 %v554_v9  ;;  %v1210_v9 = vld [vmem:[#allocation10 + $0x4] ss:$0 sm:$0xff] }
 0x61e   :  { %v1430_v10 = vpop.eup %1429 }
 0x61f   :  { %v557_v42 = vsel %vm316_vm6, %v1430_v10, 0.0 }
 0x620   :  { %558 = vadd.xlane.f32.xlu0 %v557_v42 }
 0x636   :  { %566 = vrot.lane.b32.xlu0 %v1689_v38, %s1582_s0 }
 0x6a5   :  { %v556_v11 = vpop.xlane.xlu0 %555 }
 0x6a6   :  { %1431 = vrcp.f32 %v556_v11 }
 0x6a9   :  { %v559_v12 = vpop.xlane.xlu0 %558 }
 0x6aa   :  { %1433 = vrcp.f32 %v559_v12  ;;  %v1211_v12 = vld [vmem:[#allocation10 + $0x5] ss:$0 sm:$0xff] }
 0x6ad   :  { %v567_v13 = vpop.permute.xlu0 %566 }
 0x6ae   :  { %v572_v14 = vsel %vm346_vm7, %v567_v13, 0 }
 0x6af   :  { %1317 = vmatpush3.bf16.msra.mxu1 %v572_v14 }
 0x6b0   :  { %1328 = vmatprep.subr.bf16.mxu1 %v1576_v15 }
 0x6b3   :  { %v1432_v16 = vpop.eup %1431 }
 0x6b4   :  { %v562_v17 = vmul.f32 %v1432_v16, %v1428_v62 }
 0x6b6   :  { %v564_v18 = vpack.c.bf16 %v562_v17, %v562_v17 }
 0x6b7   :  { %v1434_v19 = vpop.eup %1433 }
 0x6b8   :  { %1319 = vmatmul.mubr.msk.bf16.vlgmr.msra.gmra.mxu1 %vm316_vm6, %v564_v18  ;;  %v563_v20 = vmul.f32 %v1434_v19, %v1430_v10  ;;  %v1407_v18 = vld [vmem:[%s1848_s5 + $0x18] sm:$0xff]   ;;  %v1408_v19 = vld [vmem:[%s1848_s5 + $0x10] sm:$0xff]  }
 0x6b9   :  { %1332 = vmatprep.mubr.msk.bf16.mxu1 %vm1577_vm1, %v1576_v15  ;;  %1329 = vmatpush3.bf16.msra.mxu1 %v1403_v21  ;;  %v1212_v21 = vld [vmem:[#allocation10 + $0x6] ss:$0 sm:$0xff] }
 0x6ba   :  { %v565_v38 = vpack.c.bf16 %v563_v20, %v563_v20  ;;  %1330 = vmatprep.subr.bf16.mxu1 %v1576_v15  ;;  %v1409_v20 = vld [vmem:[%s1848_s5 + $0x8] sm:$0xff]  }
 0x6bc   :  { %1325 = vmatmul.mubr.msk.bf16.vlgmr.msra.gmra.mxu0 %vm316_vm6, %v565_v38  ;;  %v1410_v38 = vld [vmem:[%s1848_s5] sm:$0xff]   ;;  %s1584_s5 = smov [#allocation12]  }
 0x6bd   :  { %1340 = vmatprep.mubr.msk.bf16.mxu0 %vm1577_vm1, %v1576_v15  ;;  %1331 = vmatpush3.bf16.msra.mxu1 %v1404_v22  ;;  %s1180_s10 = sshll.u32 %s1584_s5, 4  ;;  %s1181_s10 = int_to_ptr.vmem [resolvable:$true] %s1180_s10 }
 0x6be   :  { %1344 = vmatprep.subr.bf16.mxu1 %v1576_v15  ;;  %1337 = vmatpush3.bf16.msra.mxu0 %v1405_v2  ;;  %s1537_s11 = scalar_lea.vmem %s1181_s10, 128  ;;  %p1542_p7 = scmp.lt.s32.totalorder %s1181_s10, %s1181_s10 }
 0x6bf   :  { %1338 = vmatprep.subr.bf16.mxu0 %v1576_v15  ;;  %p1538_p6 = scmp.ne.s32.totalorder %s1181_s10, %s1537_s11  ;;  %p1543_p8 = scmp.lt.s32.totalorder %s1537_s11, %s1537_s11 }
 0x6c1   :  { %p1544_p9 = por %p1543_p8, %p1542_p7 }
 0x6c3   :  { %p1545_p10 = pnand %p1544_p9, %p1538_p6 }
 0x778   :  { %v608_v23 = vpop.f32.mrf.mxu1 }
 0x77a   :  { %v1320_v24 = vpop.f32.mrf.mxu1 }
 0x77c   :  { %v611_v25 = vpop.f32.mrf.mxu1  ;;  %v656_v26 = vpop.f32.mrf.mxu0 }
 0x77d   :  { %v1396_v27 = vpack.i.bf16 %v656_v26, %v608_v23 }
 0x77e   :  { %v1321_v28 = vpop.f32.mrf.mxu1  ;;  %v1326_v29 = vpop.f32.mrf.mxu0 }
 0x77f   :  { %1397 = vrot.lane.b32.xlu1 %v1396_v27, %s1583_s25 }
 0x780   :  { %v659_v30 = vpop.f32.mrf.mxu0 }
 0x782   :  { %v1327_v33 = vpop.f32.mrf.mxu0 }
 0x7f1   :  { %v1398_v34 = vpop.permute.xlu1 %1397 }
 0x7f2   :  { %v1400_v35 = vunpack.i.h.bf16 %v1398_v34  ;;  %v1399_v36 = vunpack.i.l.bf16 %v1398_v34 }
 0x7f4   :  { %v671_v37 = vsel %vm216_vm2, %v1754_v43, %v1400_v35  ;;  %v670_v40 = vsel %vm216_vm2, %v1752_v39, %v1399_v36 }
 0x7f5   :  { %v672_v41 = vpack.c.bf16 %v671_v37, %v670_v40 }
 0x7f7   :  { %1333 = vmatmul.mubr.msk.bf16.vlgmr.msra.gmra.mxu1 %vm105_vm0, %v672_v41 }
 0x7f8   :  { %1352 = vmatprep.mubr.msk.bf16.mxu1 %vm1577_vm1, %v1576_v15  ;;  %1345 = vmatpush3.bf16.msra.mxu1 %v1407_v18 }
 0x7f9   :  { %1346 = vmatprep.subr.bf16.mxu1 %v1576_v15 }
 0x7fc   :  { %1347 = vmatpush3.bf16.msra.mxu1 %v1408_v19 }
 0x7fd   :  { %1348 = vmatprep.subr.bf16.mxu1 %v1576_v15 }
 0x800   :  { %1349 = vmatpush3.bf16.msra.mxu1 %v1409_v20  ;;  %v1223_v20 = vld [vmem:[#allocation10 + $0x9] ss:$0 sm:$0xff] }
 0x801   :  { %1350 = vmatprep.subr.bf16.mxu1 %v1576_v15 }
 0x804   :  { %1351 = vmatpush3.bf16.msra.mxu1 %v1410_v38 }
 0x805   :  { %1370 = vmatprep.subr.bf16.mxu1 %v1576_v15 }
 0x8b7   :  { %v731_v45 = vpop.f32.mrf.mxu1 }
 0x8b8   :  { %v732_v46 = vadd.f32 %v1206_v44, %v731_v45 }
 0x8b9   :  { %v1334_v47 = vpop.f32.mrf.mxu1 }
 0x8ba   :  { %v738_v49 = vadd.f32 %v732_v46, %v1680_v31 }
 0x8bb   :  { %v734_v50 = vpop.f32.mrf.mxu1 }
 0x8bc   :  { %v735_v52 = vadd.f32 %v1206_v44, %v734_v50  ;;  %v742_v53 = vsel %vm105_vm0, %v738_v49, 0.0 }
 0x8bd   :  { %743 = vadd.xlane.f32.xlu1 %v742_v53  ;;  %v1335_v43 = vpop.f32.mrf.mxu1 }
 0x8be   :  { %v739_v39 = vadd.f32 %v735_v52, %v1682_v32  ;;  %v1406_v32 = vld [vmem:[#allocation4] sm:$0xff]  }
 0x8bf   :  { %1339 = vmatpush3.bf16.msra.mxu0 %v1406_v32 }
 0x8c0   :  { %v745_v54 = vsel %vm105_vm0, %v739_v39, 0.0  ;;  %1356 = vmatprep.subr.bf16.mxu0 %v1576_v15 }
 0x8c1   :  { %746 = vadd.xlane.f32.xlu0 %v745_v54 }
 0x946   :  { %v744_v55 = vpop.xlane.xlu1 %743 }
 0x947   :  { %v748_v57 = vmul.f32 0.03125, %v744_v55 }
 0x949   :  { %v750_v58 = vsub.f32 %v738_v49, %v748_v57 }
 0x94a   :  { %v747_v59 = vpop.xlane.xlu0 %746 }
 0x94b   :  { %v749_v60 = vmul.f32 0.03125, %v747_v59  ;;  %v752_v61 = vmul.f32 %v750_v58, %v750_v58 }
 0x94d   :  { %v751_v63 = vsub.f32 %v739_v39, %v749_v60  ;;  %v754_v31 = vsel %vm105_vm0, %v752_v61, 0.0  ;;  %v1216_v39 = vld [vmem:[#allocation10 + $0x7] ss:$0 sm:$0xff] }
 0x94e   :  { %755 = vadd.xlane.f32.xlu0 %v754_v31 }
 0x94f   :  { %v753_v0 = vmul.f32 %v751_v63, %v751_v63 }
 0x951   :  { %v757_v1 = vsel %vm105_vm0, %v753_v0, 0.0 }
 0x952   :  { %758 = vadd.xlane.f32.xlu0 %v757_v1 }
 0x9d7   :  { %v756_v56 = vpop.xlane.xlu0 %755 }
 0x9d8   :  { %v760_v3 = vmul.f32 0.03125, %v756_v56 }
 0x9da   :  { %v762_v4 = vadd.f32 1e-12, %v760_v3 }
 0x9db   :  { %v759_v5 = vpop.xlane.xlu0 %758 }
 0x9dc   :  { %1435 = vrsqrt.f32 %v762_v4  ;;  %v761_v6 = vmul.f32 0.03125, %v759_v5 }
 0x9de   :  { %v763_v7 = vadd.f32 1e-12, %v761_v6 }
 0x9e0   :  { %1437 = vrsqrt.f32 %v763_v7 }
 0x9e9   :  { %v1436_v8 = vpop.eup %1435 }
 0x9ea   :  { %v766_v62 = vmul.f32 %v1436_v8, %v750_v58 }
 0x9ec   :  { %v772_v11 = vmul.f32 %v1210_v9, %v766_v62 }
 0x9ed   :  { %v1438_v10 = vpop.eup %1437 }
 0x9ee   :  { %v767_v42 = vmul.f32 %v1438_v10, %v751_v63  ;;  %v778_v14 = vadd.f32 %v1211_v12, %v772_v11 }
 0x9f0   :  { %v773_v13 = vmul.f32 %v1210_v9, %v767_v42 }
 0x9f2   :  { %v779_v16 = vadd.f32 %v1211_v12, %v773_v13 }
 0x9f4   :  { %v780_v17 = vpack.c.bf16 %v779_v16, %v778_v14 }
 0x9f6   :  { %1341 = vmatmul.mubr.msk.bf16.vlgmr.msra.gmra.mxu0 %vm105_vm0, %v780_v17  ;;  %v1222_v17 = vld [vmem:[#allocation10 + $0x8] ss:$0 sm:$0xff] }
 0x9f7   :  { %1358 = vmatprep.mubr.msk.bf16.mxu0 %vm1577_vm1, %v1576_v15 }
 0xab6   :  { %v839_v22 = vpop.f32.mrf.mxu0 }
 0xab7   :  { %v840_v23 = vadd.f32 %v1212_v21, %v839_v22  ;;  %v1224_v22 = vsel %vm1825_vm10, 1.0, %v1576_v15 }
 0xab8   :  { %v1342_v24 = vpop.f32.mrf.mxu0 }
 0xab9   :  { %v848_v25 = vmul.f32 0.044715, %v840_v23  ;;  %v846_v47 = vmul.f32 0.5, %v840_v23  ;;  %v997_v24 = vpack.c.bf16 %v1224_v22, %v1224_v22 }
 0xaba   :  { %v842_v26 = vpop.f32.mrf.mxu0 }
 0xabb   :  { %v850_v27 = vmul.f32 %v848_v25, %v840_v23  ;;  %v843_v28 = vadd.f32 %v1212_v21, %v842_v26  ;;  %v1411_v25 = vld [vmem:[#allocation7 + $0x8] sm:$0xff]   ;;  %v1412_v26 = vld [vmem:[#allocation7] sm:$0xff]  }
 0xabc   :  { %v1343_v29 = vpop.f32.mrf.mxu0 }
 0xabd   :  { %v852_v30 = vmul.f32 %v850_v27, %v840_v23  ;;  %v849_v33 = vmul.f32 0.044715, %v843_v28  ;;  %v847_v49 = vmul.f32 0.5, %v843_v28 }
 0xabf   :  { %v854_v34 = vadd.f32 %v852_v30, %v840_v23  ;;  %v851_v35 = vmul.f32 %v849_v33, %v843_v28 }
 0xac1   :  { %v856_v36 = vmul.f32 0.7978846, %v854_v34  ;;  %v853_v37 = vmul.f32 %v851_v35, %v843_v28  ;;  %v1413_v34 = vld [vmem:[#allocation9 + $0x8] sm:$0xff]   ;;  %v1414_v35 = vld [vmem:[#allocation9] sm:$0xff]  }
 0xac3   :  { %1439 = vtanh.f32 %v856_v36  ;;  %v855_v40 = vadd.f32 %v853_v37, %v843_v28  ;;  %v1226_v36 = vld [vmem:[#allocation10 + $0xa] ss:$0 sm:$0xff] }
 0xac5   :  { %v857_v41 = vmul.f32 0.7978846, %v855_v40 }
 0xac7   :  { %1441 = vtanh.f32 %v857_v41 }
 0xad0   :  { %v1440_v44 = vpop.eup %1439 }
 0xad1   :  { %v860_v45 = vadd.f32 1.0, %v1440_v44 }
 0xad3   :  { %v862_v52 = vmul.f32 %v860_v45, %v846_v47 }
 0xad4   :  { %v1442_v46 = vpop.eup %1441 }
 0xad5   :  { %v861_v50 = vadd.f32 1.0, %v1442_v46 }
 0xad7   :  { %v863_v53 = vmul.f32 %v861_v50, %v847_v49  ;;  %v1230_v49 = vld [vmem:[#allocation10 + $0xb] ss:$0 sm:$0xff] }
 0xad9   :  { %v864_v43 = vpack.c.bf16 %v863_v53, %v862_v52 }
 0xadb   :  { %1353 = vmatmul.mubr.msk.bf16.vlgmr.msra.gmra.mxu1 %vm902_vm8, %v864_v43 }
 0xadc   :  { %1374 = vmatprep.mubr.msk.bf16.mxu1 %vm1577_vm1, %v1576_v15  ;;  %1371 = vmatpush3.bf16.msra.mxu1 %v1413_v34 }
 0xadd   :  { %1372 = vmatprep.subr.bf16.mxu1 %v1576_v15 }
 0xae0   :  { %1373 = vmatpush3.bf16.msra.mxu1 %v1414_v35 }
 0xb9b   :  { %v940_v54 = vpop.f32.mrf.mxu1 }
 0xb9c   :  { %v941_v55 = vadd.f32 %v1216_v39, %v940_v54 }
 0xb9d   :  { %v1354_v57 = vpop.f32.mrf.mxu1 }
 0xb9e   :  { %v947_v58 = vadd.f32 %v941_v55, %v778_v14 }
 0xb9f   :  { %v943_v59 = vpop.f32.mrf.mxu1 }
 0xba0   :  { %v944_v60 = vadd.f32 %v1216_v39, %v943_v59  ;;  %v951_v61 = vsel %vm105_vm0, %v947_v58, 0.0 }
 0xba1   :  { %952 = vadd.xlane.f32.xlu1 %v951_v61  ;;  %v1355_v63 = vpop.f32.mrf.mxu1 }
 0xba2   :  { %v948_v31 = vadd.f32 %v944_v60, %v779_v16 }
 0xba4   :  { %v954_v0 = vsel %vm105_vm0, %v948_v31, 0.0 }
 0xba5   :  { %955 = vadd.xlane.f32.xlu0 %v954_v0 }
 0xc2a   :  { %v953_v1 = vpop.xlane.xlu1 %952 }
 0xc2b   :  { %v957_v2 = vmul.f32 0.03125, %v953_v1 }
 0xc2d   :  { %v959_v32 = vsub.f32 %v947_v58, %v957_v2 }
 0xc2e   :  { %v956_v56 = vpop.xlane.xlu0 %955 }
 0xc2f   :  { %v958_v3 = vmul.f32 0.03125, %v956_v56  ;;  %v961_v4 = vmul.f32 %v959_v32, %v959_v32 }
 0xc31   :  { %v960_v5 = vsub.f32 %v948_v31, %v958_v3  ;;  %v963_v6 = vsel %vm105_vm0, %v961_v4, 0.0 }
 0xc32   :  { %964 = vadd.xlane.f32.xlu1 %v963_v6 }
 0xc33   :  { %v962_v7 = vmul.f32 %v960_v5, %v960_v5 }
 0xc35   :  { %v966_v8 = vsel %vm105_vm0, %v962_v7, 0.0 }
 0xc36   :  { %967 = vadd.xlane.f32.xlu0 %v966_v8 }
 0xcbb   :  { %v965_v9 = vpop.xlane.xlu1 %964 }
 0xcbc   :  { %v969_v10 = vmul.f32 0.03125, %v965_v9 }
 0xcbe   :  { %v971_v42 = vadd.f32 1e-12, %v969_v10 }
 0xcbf   :  { %v968_v11 = vpop.xlane.xlu0 %967 }
 0xcc0   :  { %1443 = vrsqrt.f32 %v971_v42  ;;  %v970_v12 = vmul.f32 0.03125, %v968_v11 }
 0xcc2   :  { %v972_v13 = vadd.f32 1e-12, %v970_v12 }
 0xcc4   :  { %1445 = vrsqrt.f32 %v972_v13 }
 0xccd   :  { %v1444_v14 = vpop.eup %1443 }
 0xcce   :  { %v975_v16 = vmul.f32 %v1444_v14, %v959_v32 }
 0xcd0   :  { %v981_v48 = vmul.f32 %v1222_v17, %v975_v16 }
 0xcd1   :  { %v1446_v18 = vpop.eup %1445 }
 0xcd2   :  { %v976_v19 = vmul.f32 %v1446_v18, %v960_v5  ;;  %v987_v38 = vadd.f32 %v1223_v20, %v981_v48 }
 0xcd4   :  { %v982_v51 = vmul.f32 %v1222_v17, %v976_v19 }
 0xcd6   :  { %v988_v21 = vadd.f32 %v1223_v20, %v982_v51 }
 0xcd8   :  { %v998_v23 = vpack.c.bf16 %v988_v21, %v987_v38 }
 0xcda   :  { %1357 = vmatpush3.bf16.msra.mxu0 %v998_v23 }
 0xcdb   :  { %1362 = vmatprep.subr.bf16.mxu0 %v1576_v15 }
 0xcdd   :  { %1359 = vmatmul.mubr.msk.bf16.vlgmr.msra.gmra.mxu0 %vm216_vm2, %v997_v24 }
 0xcde   :  { %1363 = vmatpush3.bf16.msra.mxu0 %v1411_v25  ;;  %1366 = vmatprep.mubr.msk.bf16.mxu0 %vm1577_vm1, %v1576_v15 }
 0xcdf   :  { %1364 = vmatprep.subr.bf16.mxu0 %v1576_v15 }
 0xce2   :  { %1365 = vmatpush3.bf16.msra.mxu0 %v1412_v26 }
 0xd9d   :  { %v1036_v27 = vpop.f32.mrf.mxu0 }
 0xd9e   :  { %v1042_v28 = vpack.c.bf16 %v1036_v27, %v1036_v27 }
 0xd9f   :  { %v1360_v29 = vpop.f32.mrf.mxu0 }
 0xda0   :  { %1367 = vmatmul.mubr.msk.bf16.vlgmr.msra.gmra.mxu0 %vm105_vm0, %v1042_v28 }
 0xda1   :  { %v1039_v30 = vpop.f32.mrf.mxu0 }
 0xda3   :  { %v1361_v33 = vpop.f32.mrf.mxu0 }
 0xe60   :  { %v1101_v37 = vpop.f32.mrf.mxu0 }
 0xe61   :  { %v1102_v40 = vadd.f32 %v1226_v36, %v1101_v37 }
 0xe62   :  { %v1368_v41 = vpop.f32.mrf.mxu0 }
 0xe63   :  { %1447 = vtanh.f32 %v1102_v40 }
 0xe64   :  { %v1104_v44 = vpop.f32.mrf.mxu0 }
 0xe66   :  { %v1369_v45 = vpop.f32.mrf.mxu0 }
 0xe70   :  { %v1448_v46 = vpop.eup %1447 }
 0xe71   :  { %v1108_v47 = vpack.c.bf16 %v1448_v46, %v1448_v46 }
 0xe73   :  { %1375 = vmatmul.mubr.msk.bf16.vlgmr.msra.gmra.mxu1 %vm105_vm0, %v1108_v47 }
 0xf33   :  { %v1167_v50 = vpop.f32.mrf.mxu1 }
 0xf34   :  { %v1168_v52 = vadd.f32 %v1230_v49, %v1167_v50 }
 0xf35   :  { %v1376_v15 = vpop.f32.mrf.mxu1 }
 0xf36   :  { %1173 = vst [vmem:[#allocation12] sm:$0xff] %v1168_v52 }
 0xf37   :  { %v1170_v53 = vpop.f32.mrf.mxu1 }
 0xf38   :  { %1548 = shalt.err (!%p1545_p10)
}
 0xf39   :  { %1183 = dma.vmem_to_hbm [thread:$0]  %s1181_s10, 128, %s1852_s9, [#allocation6]   ;;  %v1377_v43 = vpop.f32.mrf.mxu1 }
 0xf3a   :  { %1565 = dma.done.wait [#allocation6], 128  }
 0xf3b   :  { %1566 = vsyncadd [#allocation6], 4294967168 }
 0xf3c   :  { %1187 = vsyncpa [#allocation5], 1 }
 0xf3d   :  { %1188 = vsyncpa [#allocation8], 1 }
 0xf3e   :  { %1189 = vsyncpa [#allocation11], 1 }
 0xf3f   :  { %1190 = vsyncpa [#allocation6], 1 }

</bundles_post_ra>
